<compile_context>
chip_gen: v7x
topology: tpu7x:2x2x1
jax: 0.10.0
libtpu: 0.0.40
codegen_flags: <defaults>
</compile_context>

<pallas_src>
import functools

import jax
import jax.numpy as jnp
from jax.experimental import pallas as pl
from jax.experimental.pallas import tpu as pltpu


def _convlstm_cell_kernel(w_ref, b_ref, patch_ref, c_ref, h_out_ref, c_out_ref,
                          *, hidden_dim):
    """One grid step handles one lane tile of the flattened (B*H*W) axis.

    w_ref     : (4*hidden, K_pad)   im2col conv weights
    b_ref     : (4*hidden, 1)       conv bias (broadcast over lanes)
    patch_ref : (K_pad, tn)         im2col patches for this lane tile
    c_ref     : (hidden, tn)        previous cell state
    h_out_ref / c_out_ref : (hidden, tn)
    """
    hd = hidden_dim

    # Single fused MXU contraction, f32 accumulation.
    acc = jnp.dot(w_ref[...], patch_ref[...],
                  preferred_element_type=jnp.float32)
    acc = acc + b_ref[...]                      # (4*hd, 1) lane-broadcast add

    # i, f, o gates in one wide sigmoid pass; g gate with one tanh pass.
    gates_sig = jax.nn.sigmoid(acc[:3 * hd, :])
    i_g = gates_sig[0 * hd:1 * hd, :]
    f_g = gates_sig[1 * hd:2 * hd, :]
    o_g = gates_sig[2 * hd:3 * hd, :]
    g_g = jnp.tanh(acc[3 * hd:4 * hd, :])

    c_cur = c_ref[...].astype(jnp.float32)
    c_next = f_g * c_cur + i_g * g_g
    h_next = o_g * jnp.tanh(c_next)

    h_out_ref[...] = h_next.astype(h_out_ref.dtype)
    c_out_ref[...] = c_next.astype(c_out_ref.dtype)


def _pick_lane_tile(n):
    """Largest lane-aligned tile that still gives >= 2 grid steps.

    >= 2 "parallel" grid steps let the work shard across v7x's two
    TensorCores; each tile stays a multiple of 128 lanes so stores are
    unmasked. Falls back to a single full-width block otherwise.
    """
    for t in (1024, 512, 256, 128):
        if n % t == 0 and n // t >= 2:
            return t
    return n


def convlstm_cell_forward(input_nchw, h_cur_nchw, c_cur_nchw,
                          weight_oihw, bias, kernel_size):
    """ConvLSTMCell.forward with PyTorch NCHW inputs/outputs.

    weight_oihw : (4*hidden, input_dim + hidden, kh, kw)  (PyTorch layout)
    bias        : (4*hidden,)
    Returns (h_next, c_next) in NCHW.
    """
    kh, kw = kernel_size
    ph, pw = kh // 2, kw // 2
    B, _, H, W = input_nchw.shape
    hidden_dim = h_cur_nchw.shape[1]
    dtype = input_nchw.dtype

    # Concat channels and zero-pad spatially ("same" padding), still NCHW.
    combined = jnp.concatenate([input_nchw, h_cur_nchw], axis=1)   # (B,Cin,H,W)
    cin = combined.shape[1]
    padded = jnp.pad(combined, ((0, 0), (0, 0), (ph, ph), (pw, pw)))

    # im2col in the wrapper: K axis ordered (tap, cin), N axis = (b, y, x),
    # spatial flattened onto the lane axis.
    taps = [padded[:, :, dy:dy + H, dx:dx + W]
            for dy in range(kh) for dx in range(kw)]               # (B,Cin,H,W)
    patch = jnp.stack(taps, axis=0)                                # (K_tap,B,Cin,H,W)
    patch = jnp.transpose(patch, (0, 2, 1, 3, 4))                  # (K_tap,Cin,B,H,W)
    N = B * H * W
    K = kh * kw * cin
    patch = patch.reshape(K, N)

    # PyTorch OIHW weights -> (4*hidden, K) matching the (tap, cin) K ordering.
    w_mat = jnp.transpose(weight_oihw, (0, 2, 3, 1)).reshape(4 * hidden_dim, K)
    b_col = bias.reshape(4 * hidden_dim, 1)

    # Pad the contraction axis up to a sublane multiple (zeros don't change
    # the matmul result); keeps the layout clean for the MXU.
    K_pad = ((K + 7) // 8) * 8
    if K_pad != K:
        patch = jnp.pad(patch, ((0, K_pad - K), (0, 0)))
        w_mat = jnp.pad(w_mat, ((0, 0), (0, K_pad - K)))

    # Previous cell state with spatial on lanes: (B, hd, H, W) -> (hd, B*H*W).
    c_flat = jnp.transpose(c_cur_nchw, (1, 0, 2, 3)).reshape(hidden_dim, N)

    tn = _pick_lane_tile(N)
    grid = (N // tn,)

    kernel = functools.partial(_convlstm_cell_kernel, hidden_dim=hidden_dim)
    out_sds = jax.ShapeDtypeStruct((hidden_dim, N), dtype)

    h_flat, c_next_flat = pl.pallas_call(
        kernel,
        out_shape=(out_sds, out_sds),
        grid=grid,
        in_specs=[
            pl.BlockSpec((4 * hidden_dim, K_pad), lambda j: (0, 0)),
            pl.BlockSpec((4 * hidden_dim, 1), lambda j: (0, 0)),
            pl.BlockSpec((K_pad, tn), lambda j: (0, j)),
            pl.BlockSpec((hidden_dim, tn), lambda j: (0, j)),
        ],
        out_specs=(
            pl.BlockSpec((hidden_dim, tn), lambda j: (0, j)),
            pl.BlockSpec((hidden_dim, tn), lambda j: (0, j)),
        ),
        compiler_params=pltpu.CompilerParams(
            dimension_semantics=("parallel",)),
    )(w_mat, b_col, patch, c_flat)

    # (hd, B*H*W) -> NCHW (cheap reshape + transpose in the wrapper).
    h_next = jnp.transpose(h_flat.reshape(hidden_dim, B, H, W), (1, 0, 2, 3))
    c_next = jnp.transpose(c_next_flat.reshape(hidden_dim, B, H, W),
                           (1, 0, 2, 3))
    return h_next, c_next


def _reference_forward(input_nchw, h_cur, c_cur, weight_oihw, bias, kernel_size):
    """Pure-JAX reference matching the PyTorch module exactly (NCHW)."""
    kh, kw = kernel_size
    combined = jnp.concatenate([input_nchw, h_cur], axis=1)
    conv = jax.lax.conv_general_dilated(
        combined, weight_oihw, window_strides=(1, 1),
        padding=((kh // 2, kh // 2), (kw // 2, kw // 2)),
        dimension_numbers=("NCHW", "OIHW", "NCHW"))
    conv = conv + bias[None, :, None, None]
    cc_i, cc_f, cc_o, cc_g = jnp.split(conv, 4, axis=1)
    i = jax.nn.sigmoid(cc_i)
    f = jax.nn.sigmoid(cc_f)
    o = jax.nn.sigmoid(cc_o)
    g = jnp.tanh(cc_g)
    c_next = f * c_cur + i * g
    h_next = o * jnp.tanh(c_next)
    return h_next, c_next


if __name__ == "__main__":
    # Module config (synthetic, deterministic init — no checkpoint load).
    input_dim = 4
    hidden_dim = 8
    kernel_size = (3, 3)
    B, H, W = 2, 16, 16
    cin_total = input_dim + hidden_dim

    key = jax.random.PRNGKey(0)
    k_w, k_b, k_x, k_h, k_c = jax.random.split(key, 5)

    # PyTorch Conv2d default init: U(-bound, bound), bound = 1/sqrt(fan_in).
    fan_in = cin_total * kernel_size[0] * kernel_size[1]
    bound = 1.0 / (fan_in ** 0.5)
    weight = jax.random.uniform(
        k_w, (4 * hidden_dim, cin_total, kernel_size[0], kernel_size[1]),
        minval=-bound, maxval=bound, dtype=jnp.float32)
    bias = jax.random.uniform(k_b, (4 * hidden_dim,),
                              minval=-bound, maxval=bound, dtype=jnp.float32)

    x = jax.random.normal(k_x, (B, input_dim, H, W), dtype=jnp.float32)
    h_cur = jax.random.normal(k_h, (B, hidden_dim, H, W), dtype=jnp.float32)
    c_cur = jax.random.normal(k_c, (B, hidden_dim, H, W), dtype=jnp.float32)

    h_next, c_next = convlstm_cell_forward(x, h_cur, c_cur, weight, bias,
                                           kernel_size)
    jax.block_until_ready((h_next, c_next))

    h_ref, c_ref = _reference_forward(x, h_cur, c_cur, weight, bias,
                                      kernel_size)
    assert h_next.shape == (B, hidden_dim, H, W)
    assert c_next.shape == (B, hidden_dim, H, W)
    assert jnp.allclose(h_next, h_ref, atol=1e-5, rtol=1e-5)
    assert jnp.allclose(c_next, c_ref, atol=1e-5, rtol=1e-5)

    print("KERNEL_OK")
</pallas_src>

<mosaic_0001>
module attributes {stable_mosaic.version = 11 : i64} {
  func.func @_convlstm_cell_kernel(%arg0: i32, %arg1: memref<32x112xf32, #tpu.memory_space<vmem>>, %arg2: memref<32x1xf32, #tpu.memory_space<vmem>>, %arg3: memref<112x256xf32, #tpu.memory_space<vmem>>, %arg4: memref<8x256xf32, #tpu.memory_space<vmem>>, %arg5: memref<8x256xf32, #tpu.memory_space<vmem>>, %arg6: memref<8x256xf32, #tpu.memory_space<vmem>>) attributes {dimension_semantics = [#tpu.dimension_semantics<parallel>], iteration_bounds = array<i64: 2>, scalar_prefetch = 0 : i64, scratch_operands = 0 : i64, tpu.core_type = #tpu.core_type<tc>, window_params = [{pipeline_mode = #tpu.pipeline_mode<synchronous>, transform_indices = @transform_0, window_bounds = array<i64: 32, 112>}, {pipeline_mode = #tpu.pipeline_mode<synchronous>, transform_indices = @transform_1, window_bounds = array<i64: 32, 1>}, {transform_indices = @transform_2, window_bounds = array<i64: 112, 256>}, {transform_indices = @transform_3, window_bounds = array<i64: 8, 256>}, {transform_indices = @transform_4, window_bounds = array<i64: 8, 256>}, {transform_indices = @transform_5, window_bounds = array<i64: 8, 256>}]} {
    %c0 = arith.constant 0 : index
    %c0_0 = arith.constant 0 : index
    %0 = vector.load %arg1[%c0, %c0_0] : memref<32x112xf32, #tpu.memory_space<vmem>>, vector<32x112xf32>
    %c0_1 = arith.constant 0 : index
    %c0_2 = arith.constant 0 : index
    %1 = vector.load %arg3[%c0_1, %c0_2] : memref<112x256xf32, #tpu.memory_space<vmem>>, vector<112x256xf32>
    %cst = arith.constant dense<0.000000e+00> : vector<32x256xf32>
    %2 = tpu.matmul %0, %1, %cst {dimension_numbers = #tpu.dot_dimension_numbers<[1], [0], [0], [1], [0, 0, 1, 1], [], []>} : vector<32x112xf32>, vector<112x256xf32>, vector<32x256xf32> -> vector<32x256xf32>
    %c0_3 = arith.constant 0 : index
    %c0_4 = arith.constant 0 : index
    %3 = vector.load %arg2[%c0_3, %c0_4] : memref<32x1xf32, #tpu.memory_space<vmem>>, vector<32x1xf32>
    %4 = vector.broadcast %3 : vector<32x1xf32> to vector<32x256xf32>
    %5 = arith.addf %2, %4 : vector<32x256xf32>
    %6 = vector.extract_strided_slice %5 {offsets = [0, 0], sizes = [24, 256], strides = [1, 1]} : vector<32x256xf32> to vector<24x256xf32>
    %7 = arith.negf %6 : vector<24x256xf32>
    %8 = math.exp %7 : vector<24x256xf32>
    %cst_5 = arith.constant 1.000000e+00 : f32
    %9 = vector.broadcast %cst_5 : f32 to vector<24x256xf32>
    %10 = arith.addf %9, %8 : vector<24x256xf32>
    %11 = arith.divf %9, %10 : vector<24x256xf32>
    %12 = vector.extract_strided_slice %11 {offsets = [0, 0], sizes = [8, 256], strides = [1, 1]} : vector<24x256xf32> to vector<8x256xf32>
    %13 = vector.extract_strided_slice %11 {offsets = [8, 0], sizes = [8, 256], strides = [1, 1]} : vector<24x256xf32> to vector<8x256xf32>
    %14 = vector.extract_strided_slice %11 {offsets = [16, 0], sizes = [8, 256], strides = [1, 1]} : vector<24x256xf32> to vector<8x256xf32>
    %15 = vector.extract_strided_slice %5 {offsets = [24, 0], sizes = [8, 256], strides = [1, 1]} : vector<32x256xf32> to vector<8x256xf32>
    %16 = math.tanh %15 : vector<8x256xf32>
    %c0_6 = arith.constant 0 : index
    %c0_7 = arith.constant 0 : index
    %17 = vector.load %arg4[%c0_6, %c0_7] : memref<8x256xf32, #tpu.memory_space<vmem>>, vector<8x256xf32>
    %18 = arith.mulf %13, %17 : vector<8x256xf32>
    %19 = arith.mulf %12, %16 : vector<8x256xf32>
    %20 = arith.addf %18, %19 : vector<8x256xf32>
    %21 = math.tanh %20 : vector<8x256xf32>
    %22 = arith.mulf %14, %21 : vector<8x256xf32>
    %c0_8 = arith.constant 0 : index
    %c0_9 = arith.constant 0 : index
    %23 = vector.load %arg5[%c0_8, %c0_9] : memref<8x256xf32, #tpu.memory_space<vmem>>, vector<8x256xf32>
    tpu.vector_store %arg5[%c0_8, %c0_9], %22 {strides = array<i32>} : memref<8x256xf32, #tpu.memory_space<vmem>>, vector<8x256xf32>,
    %c0_10 = arith.constant 0 : index
    %c0_11 = arith.constant 0 : index
    %24 = vector.load %arg6[%c0_10, %c0_11] : memref<8x256xf32, #tpu.memory_space<vmem>>, vector<8x256xf32>
    tpu.vector_store %arg6[%c0_10, %c0_11], %20 {strides = array<i32>} : memref<8x256xf32, #tpu.memory_space<vmem>>, vector<8x256xf32>,
    return
  }
  func.func @transform_0(%arg0: i32) -> (i32, i32) {
    %c0_i32 = arith.constant 0 : i32
    %c0_i32_0 = arith.constant 0 : i32
    %c0_i32_1 = arith.constant 0 : i32
    return %c0_i32, %c0_i32_0 : i32, i32
  }
  func.func @transform_1(%arg0: i32) -> (i32, i32) {
    %c0_i32 = arith.constant 0 : i32
    %c0_i32_0 = arith.constant 0 : i32
    %c0_i32_1 = arith.constant 0 : i32
    return %c0_i32, %c0_i32_0 : i32, i32
  }
  func.func @transform_2(%arg0: i32) -> (i32, i32) {
    %c0_i32 = arith.constant 0 : i32
    %c0_i32_0 = arith.constant 0 : i32
    return %c0_i32, %arg0 : i32, i32
  }
  func.func @transform_3(%arg0: i32) -> (i32, i32) {
    %c0_i32 = arith.constant 0 : i32
    %c0_i32_0 = arith.constant 0 : i32
    return %c0_i32, %arg0 : i32, i32
  }
  func.func @transform_4(%arg0: i32) -> (i32, i32) {
    %c0_i32 = arith.constant 0 : i32
    %c0_i32_0 = arith.constant 0 : i32
    return %c0_i32, %arg0 : i32, i32
  }
  func.func @transform_5(%arg0: i32) -> (i32, i32) {
    %c0_i32 = arith.constant 0 : i32
    %c0_i32_0 = arith.constant 0 : i32
    return %c0_i32, %arg0 : i32, i32
  }
}

</mosaic_0001>

<bundles_post_ra>
// kernel: tpu_custom_call.1
= control target key start
LH: loop header
LB: loop body
LE: loop exit
PB: predicated region body
PF: predicated region fallthrough
CT: control target
= control target key end

     0   :  { %s1344_s0 = inlined_call_operand.vmem [shape: f32[32,112], index: 0, kind: input, shape index: {}]   ;;  %s1345_s1 = inlined_call_operand.vmem [shape: f32[32,1], index: 1, kind: input, shape index: {}]   ;;  %s1346_s2 = inlined_call_operand.hbm [shape: f32[112,512], index: 2, kind: input, shape index: {}]   ;;  %s1347_s3 = inlined_call_operand.hbm [shape: f32[8,512], index: 3, kind: input, shape index: {}]   ;;  %s1348_s4 = inlined_call_operand.hbm [shape: f32[8,512], index: 4, kind: output, shape index: {0}]   ;;  %s1349_s5 = inlined_call_operand.hbm [shape: f32[8,512], index: 5, kind: output, shape index: {1}]  }
   0x1   :  { %1352 = sst [smem:[#allocation14_spill]] %s1346_s2 }
   0x2   :  { %11 = vsyncpa [#allocation3], 0 }
   0x3   :  { %13 = vsyncpa [#allocation3 + $0x1], 0 }
   0x4   :  { %14 = vsyncpa [#allocation6], 0 }
   0x5   :  { %16 = vsyncpa [#allocation6 + $0x1], 0 }
   0x6   :  { %17 = vsyncpa [#allocation4], 0 }
   0x7   :  { %19 = vsyncpa [#allocation4 + $0x1], 0 }
   0x8   :  { %20 = vsyncpa [#allocation9], 0 }
   0x9   :  { %22 = vsyncpa [#allocation9 + $0x1], 0  ;;  %s1043_s18 = smov 0   ;;  %s1045_s19 = smov 0  }
   0xa   :  { %s1047_s20 = smov 0   ;;  %s1049_s21 = smov 0  }
   0xb LB: > { %s1064_s22 = sadd.s32 4294967295, %s1002_s21   ;;  %s667_s23 = sadd.s32 4294967294, %s1002_s21   ;;  %s1002_s21 = sphi %s1049_s21, %s1368_s21   ;;  %s998_s20 = sphi %s1047_s20, %s1367_s20   ;;  %s994_s19 = sphi %s1045_s19, %s1366_s19   ;;  %s990_s18 = sphi %s1043_s18, %s1365_s18  }
   0xc   : > { %s1068_s24 = sadd.s32 1, %s1002_s21   ;;  %s77_s25 = sadd.s32 1, %s998_s20 }
   0xd   : > { %s74_s26 = ssub.s32 %s1002_s21, %s1068_s24  ;;  %p84_p0 = scmp.ne.s32.totalorder %s998_s20, %s994_s19 }
   0xe   : > { %p75_p1 = scmp.eq.s32.totalorder %s74_s26, 0  ;;  %p85_p2 = scmp.eq.s32.totalorder %s1002_s21, 0 }
   0xf   : > { %p90_p3 = scmp.ne.s32.totalorder %s994_s19, %s990_s18  ;;  %p91_p4 = scmp.eq.s32.totalorder %s1064_s22, 0 }
  0x10   : > { %s1080_s27 = scalar_select %p75_p1, %s998_s20, %s77_s25  }
  0x11   : > { %p86_p5 = por %p85_p2, %p84_p0  ;;  %p1082_p6 = por %p91_p4, %p90_p3 }
  0x12   : > { %p140_p7 = scmp.eq.s32.totalorder %s1064_s22, 1  ;;  %p146_p8 = scmp.eq.s32.totalorder %s667_s23, 1 }
  0x13   : > { %s1353_s28 = scalar_select %p1082_p6, 1, 0 }
  0x14   : > { %p767_p10 = scmp.lt.s32.totalorder %s1002_s21, 2  ;;  %p1089_p11 = por %p140_p7, %p84_p0 }
  0x15   : > { %p1093_p12 = por %p146_p8, %p90_p3  ;;  %s1098_s6 = sand.u32 1, %s998_s20  }
  0x16   : > { %s1354_s29 = scalar_select %p1089_p11, 1, 0 }
  0x17   : > { %s1355_s30 = scalar_select %p1093_p12, 1, 0 }
  0x18   : > { %s697_s7 = sshll.u32 %s1002_s21, 8  ;;  %s743_s8 = smul.u32 224, %s1098_s6 }
  0x19   : > { %s1356_s2 = sld [smem:[#allocation14_spill]]  ;;  %p1109_p13 = pnand %p767_p10, %p86_p5 }
  0x1a   : > { %s202_s13 = scalar_lea.vmem [#allocation2], %s743_s8  ;;  %s199_s15 = scalar_lea.sflag [#allocation3], %s1098_s6 }
  0x1b   : > { %s209_s14 = sshll.u32 %s202_s13, 4  ;;  %p842_p2 = pneg %p1109_p13  ;;  %s1113_s14 = int_to_ptr.vmem [resolvable:$true] %s209_s14 }
  0x1f   : > { %s1107_s11 = scalar_lea.hbm %s1356_s2, %s697_s7  ;;  %s845_s25 = scalar_lea.hbm %s1356_s2, 7168 }
  0x20   : > { %s840_s16 = scalar_lea.hbm %s1107_s11, 3584  ;;  %p846_p5 = scmp.lt.u32.totalorder %s1107_s11, %s1356_s2 }
  0x21   : > { %p841_p1 = scmp.ne.s32.totalorder %s1107_s11, %s840_s16  ;;  %p847_p7 = scmp.lt.u32.totalorder %s845_s25, %s840_s16 }
  0x22   : > { %p849_p10 = scmp.lt.u32.totalorder %s840_s16, %s1107_s11 }
  0x23   : > { %p843_p3 = pnand %p842_p2, %p841_p1  ;;  %p848_p8 = por %p847_p7, %p846_p5 }
  0x25   : > { %p844_p4 = pneg %p843_p3  ;;  %p850_p9 = por %p849_p10, %p848_p8 }
  0x27   : > { %p851_p0 = pnand %p850_p9, %p844_p4 }
  0x29   : > { %854 = shalt.err (!%p851_p0)
}
  0x2a   : > { %s855_s8 = scalar_lea.vmem %s1113_s14, 3584  ;;  %s1004_s10 = smov [#allocation2]  }
  0x2b   : > { %p856_p1 = scmp.ne.s32.totalorder %s1113_s14, %s855_s8  ;;  %s860_s13 = sshll.u32 %s1004_s10, 4  ;;  %s861_s13 = int_to_ptr.vmem [resolvable:$false] %s860_s13 }
  0x2c   : > { %s862_s17 = scalar_lea.vmem %s861_s13, 7168  ;;  %p863_p11 = scmp.lt.s32.totalorder %s1113_s14, %s861_s13 }
  0x2d   : > { %p858_p3 = pnand %p856_p1, %p842_p2  ;;  %p864_p5 = scmp.lt.s32.totalorder %s862_s17, %s855_s8 }
  0x2f   : > { %p859_p12 = pneg %p858_p3  ;;  %p865_p7 = por %p864_p5, %p863_p11 }
  0x31   : > { %p866_p8 = pnand %p865_p7, %p859_p12 }
  0x33   : > { %869 = shalt.err (!%p866_p8)
}
  0x34   : > { %s1005_s16 = smov 512   ;;  %s1006_s23 = smov 256  }
  0x35   : > { %s1007_s25 = smov 16   ;;  %p236_p9 = scmp.lt.s32.totalorder %s1002_s21, 3 }
  0x36   : > { %756 = dma.hbm_to_vmem [thread:$0]  (!%p1109_p13), %s1107_s11, 3584, %s1113_s14, %s199_s15, %s1005_s16, %s1006_s23, %s1007_s25  }
  0x37   : > { %s672_s26 = sshll.u32 %s1098_s6, 4  ;;  %s1151_s10 = scalar_lea.hbm %s1347_s3, %s697_s7 }
  0x38   : > { %p1358_p11 = scmp.ge.s32.totalorder %s1002_s21, 1  ;;  %s223_s17 = scalar_lea.vmem [#allocation5], %s672_s26 }
  0x39   : > { %s231_s2 = sshll.u32 %s223_s17, 4  ;;  %s220_s11 = scalar_lea.sflag [#allocation6], %s1098_s6  ;;  %s232_s2 = int_to_ptr.vmem [resolvable:$true] %s231_s2 }
  0x3a   : > { %p1155_p12 = pnand %p1358_p11, %p236_p9  ;;  %s870_s14 = scalar_lea.hbm %s1151_s10, 256 }
  0x3b   : > { %p871_p0 = scmp.ne.s32.totalorder %s1151_s10, %s870_s14  ;;  %s875_s16 = scalar_lea.hbm %s1347_s3, 512 }
  0x3c   : > { %s1359_s13 = scalar_select %p1155_p12, 1, 0 }
  0x3d   : > { %p873_p4 = pnand %p871_p0, %p842_p2  ;;  %p876_p1 = scmp.lt.u32.totalorder %s1151_s10, %s1347_s3 }
  0x3e   : > { %p877_p3 = scmp.lt.u32.totalorder %s875_s16, %s870_s14  ;;  %p879_p7 = scmp.lt.u32.totalorder %s870_s14, %s1151_s10 }
  0x3f   : > { %p874_p10 = pneg %p873_p4 }
  0x40   : > { %p878_p5 = por %p877_p3, %p876_p1 }
  0x42   : > { %p880_p8 = por %p879_p7, %p878_p5 }
  0x44   : > { %p881_p9 = pnand %p880_p8, %p874_p10 }
  0x46   : > { %884 = shalt.err (!%p881_p9)
}
  0x47   : > { %s885_s6 = scalar_lea.vmem %s232_s2, 256  ;;  %s1008_s26 = smov [#allocation5]  }
  0x48   : > { %p886_p11 = scmp.ne.s32.totalorder %s232_s2, %s885_s6  ;;  %s890_s9 = sshll.u32 %s1008_s26, 4  ;;  %s891_s9 = int_to_ptr.vmem [resolvable:$false] %s890_s9 }
  0x49   : > { %s892_s8 = scalar_lea.vmem %s891_s9, 512  ;;  %p893_p6 = scmp.lt.s32.totalorder %s232_s2, %s891_s9 }
  0x4a   : > { %p888_p0 = pnand %p886_p11, %p842_p2  ;;  %p894_p12 = scmp.lt.s32.totalorder %s892_s8, %s885_s6 }
  0x4c   : > { %p889_p4 = pneg %p888_p0  ;;  %p895_p1 = por %p894_p12, %p893_p6 }
  0x4e   : > { %p896_p3 = pnand %p895_p1, %p889_p4 }
  0x50   : > { %899 = shalt.err (!%p896_p3)
}
  0x51   : > { %759 = dma.hbm_to_vmem [thread:$0]  (!%p1109_p13), %s1151_s10, 256, %s232_s2, %s220_s11  }
  0x52   : > { %p1360_p10 = scmp.ne.s32.totalorder %s1359_s13, 0 }
  0x53   : > { %s1182_s17 = sand.u32 (!%p1360_p10), 1, %s994_s19   ;;  %p1361_p6 = scmp.ne.s32.totalorder (!%p1360_p10), %s1353_s28, 0 }
  0x54   : > { %240 = sbr.rel (%p1360_p10) target bundleno = 413 (0x19d), region = 36  ;;  %s243_s7 = scalar_lea.sflag (!%p1360_p10), [#allocation3], %s1182_s17 }
  0x55   : > { %s744_s14 = smul.u32 (!%p1360_p10), 224, %s1182_s17 }
  0x57   : > { %s1186_s15 = scalar_lea.vmem (!%p1360_p10), [#allocation2], %s744_s14 }
  0x5b   : > { %973 = dma.done.wait (%p1361_p6), %s243_s7, 3584  }
  0x5c   : > { %975 = vsyncadd (%p1361_p6), %s243_s7, 4294963712  ;;  %s1193_s2 = sshll.u32 %s1182_s17, 4  ;;  %s252_s12 = scalar_lea.sflag [#allocation6], %s1182_s17 }
  0x5d   : > { %s255_s10 = scalar_lea.vmem [#allocation5], %s1193_s2 }
  0x5e   : > { %977 = dma.done.wait (%p1361_p6), %s252_s12, 256  }
  0x5f   : > { %979 = vsyncadd (%p1361_p6), %s252_s12, 4294967040  ;;  %v1009_v0 = vmov 0.0   ;;  %v1010_v1 = vmov 0   ;;  %v301_v2 = vld [vmem:[%s1186_s15 + $0x8] sm:$0xff]  ;;  %v303_v3 = vld [vmem:[%s1186_s15 + $0x18] sm:$0xff]  ;;  %vm352_vm0 = vcmask 916480  }
  0x60   : > { %429 = vmatprep.mubr.f32.mxu0 %v1009_v0  ;;  %441 = vmatprep.mubr.f32.mxu1 %v1009_v0  ;;  %v300_v4 = vld [vmem:[%s1186_s15] sm:$0xff]  ;;  %v701_v5 = vpack.c.bf16 %v303_v3, %v301_v2  ;;  %v302_v6 = vld [vmem:[%s1186_s15 + $0x10] sm:$0xff]  ;;  %v305_v7 = vld [vmem:[%s1186_s15 + $0x28] sm:$0xff]  ;;  %s699_s11 = sshll.u32 %s1064_s22, 8  ;;  %s291_s16 = scalar_lea.vmem [#allocation8], %s1193_s2 }
  0x61   : > { %806 = vset.pattern.permute.xlu0 %v1010_v1  ;;  %807 = vset.pattern.permute.xlu1 %v1010_v1  ;;  %v307_v8 = vld [vmem:[%s1186_s15 + $0x38] sm:$0xff]  ;;  %v703_v9 = vpack.c.bf16 %v302_v6, %v300_v4  ;;  %v304_v11 = vld [vmem:[%s1186_s15 + $0x20] sm:$0xff]  ;;  %v306_v12 = vld [vmem:[%s1186_s15 + $0x30] sm:$0xff]  ;;  %s542_s23 = sshll.u32 %s291_s16, 4  ;;  %s514_s26 = scalar_lea.sflag [#allocation9], %s1182_s17  ;;  %s1270_s23 = int_to_ptr.vmem [resolvable:$true] %s542_s23 }
  0x62   : > { %v705_v10 = vpack.c.bf16 %v307_v8, %v305_v7  ;;  %v309_v13 = vld [vmem:[%s1186_s15 + $0x48] sm:$0xff]  ;;  %702 = vmatprep.subr.bf16.mxu0 %v701_v5  ;;  %v311_v14 = vld [vmem:[%s1186_s15 + $0x58] sm:$0xff]  ;;  %729 = vmatprep.subr.bf16.mxu1 %v701_v5  ;;  %v707_v15 = vpack.c.bf16 %v306_v12, %v304_v11  ;;  %v308_v17 = vld [vmem:[%s1186_s15 + $0x40] sm:$0xff]  ;;  %s900_s9 = scalar_lea.vmem %s1270_s23, 256  ;;  %p1362_p2 = scmp.ne.s32.totalorder %s1354_s29, 0 }
  0x63   : > { %704 = vmatpush1.bf16.msra.mxu0 %v703_v9  ;;  %736 = vmatpush1.bf16.msra.mxu1 %v703_v9  ;;  %v709_v16 = vpack.c.bf16 %v311_v14, %v309_v13  ;;  %v310_v18 = vld [vmem:[%s1186_s15 + $0x50] sm:$0xff]  ;;  %v313_v19 = vld [vmem:[%s1186_s15 + $0x68] sm:$0xff]  ;;  %v315_v20 = vld [vmem:[%s1186_s15 + $0x78] sm:$0xff]  ;;  %p901_p13 = scmp.ne.s32.totalorder %s1270_s23, %s900_s9  ;;  %s1011_s8 = smov [#allocation8]  }
  0x64   : > { %706 = vmatprep.subr.bf16.mxu0 %v705_v10  ;;  %730 = vmatprep.subr.bf16.mxu1 %v705_v10  ;;  %v711_v21 = vpack.c.bf16 %v310_v18, %v308_v17  ;;  %v713_v22 = vpack.c.bf16 %v315_v20, %v313_v19  ;;  %v312_v23 = vld [vmem:[%s1186_s15 + $0x60] sm:$0xff]  ;;  %v314_v24 = vld [vmem:[%s1186_s15 + $0x70] sm:$0xff]  ;;  %v317_v25 = vld [vmem:[%s1186_s15 + $0x88] sm:$0xff]  ;;  %s904_s14 = sshll.u32 %s1011_s8, 4  ;;  %s905_s14 = int_to_ptr.vmem [resolvable:$false] %s904_s14 }
  0x65   : > { %v319_v26 = vld [vmem:[%s1186_s15 + $0x98] sm:$0xff]  ;;  %v328_v27 = vld [vmem:[%s1345_s1] sm:$0xff]  ;;  %v330_v28 = vld [vmem:[%s1345_s1 + $0x10] sm:$0xff]  ;;  %v715_v29 = vpack.c.bf16 %v314_v24, %v312_v23  ;;  %p902_p12 = pnand %p901_p13, %p1362_p2  ;;  %s906_s7 = scalar_lea.vmem %s905_s14, 512 }
  0x66   : > { %334 = vperm.xlu0 %806, %v328_v27   ;;  %v329_v30 = vld [vmem:[%s1345_s1 + $0x8] sm:$0xff]  ;;  %v717_v31 = vpack.c.bf16 %v319_v26, %v317_v25  ;;  %v316_v32 = vld [vmem:[%s1186_s15 + $0x80] sm:$0xff]  ;;  %v318_v33 = vld [vmem:[%s1186_s15 + $0x90] sm:$0xff]  ;;  %344 = vperm.xlu1 %807, %v330_v28   ;;  %p907_p7 = scmp.lt.s32.totalorder %s1270_s23, %s905_s14  ;;  %p908_p8 = scmp.lt.s32.totalorder %s906_s7, %s900_s9 }
  0x67   : > { %708 = vmatpush1.bf16.msra.mxu0 %v707_v15  ;;  %737 = vmatpush1.bf16.msra.mxu1 %v707_v15  ;;  %v321_v34 = vld [vmem:[%s1186_s15 + $0xa8] sm:$0xff]  ;;  %v323_v35 = vld [vmem:[%s1186_s15 + $0xb8] sm:$0xff]  ;;  %v719_v37 = vpack.c.bf16 %v318_v33, %v316_v32  ;;  %v320_v39 = vld [vmem:[%s1186_s15 + $0xa0] sm:$0xff]  ;;  %p903_p5 = pneg %p902_p12 }
  0x68   : > { %710 = vmatprep.subr.bf16.mxu0 %v709_v16  ;;  %731 = vmatprep.subr.bf16.mxu1 %v709_v16  ;;  %v331_v36 = vld [vmem:[%s1345_s1 + $0x18] sm:$0xff]  ;;  %v721_v38 = vpack.c.bf16 %v323_v35, %v321_v34  ;;  %v322_v40 = vld [vmem:[%s1186_s15 + $0xb0] sm:$0xff]  ;;  %v325_v41 = vld [vmem:[%s1186_s15 + $0xc8] sm:$0xff]  ;;  %p909_p9 = por %p908_p8, %p907_p7 }
  0x69   : > { %v327_v42 = vld [vmem:[%s1186_s15 + $0xd8] sm:$0xff]  ;;  %v723_v43 = vpack.c.bf16 %v322_v40, %v320_v39  ;;  %v324_v45 = vld [vmem:[%s1186_s15 + $0xc0] sm:$0xff]  ;;  %v326_v46 = vld [vmem:[%s1186_s15 + $0xd0] sm:$0xff] }
  0x6a   : > { %339 = vperm.xlu0 %806, %v329_v30   ;;  %349 = vperm.xlu1 %807, %v331_v36   ;;  %v725_v44 = vpack.c.bf16 %v327_v42, %v325_v41  ;;  %v727_v47 = vpack.c.bf16 %v326_v46, %v324_v45  ;;  %v296_v48 = vld [vmem:[%s1344_s0] sm:$0xff]  ;;  %v298_v49 = vld [vmem:[%s1344_s0 + $0x10] sm:$0xff]  ;;  %v297_v50 = vld [vmem:[%s1344_s0 + $0x8] sm:$0xff]  ;;  %p910_p11 = pnand %p909_p9, %p903_p5 }
  0x6b   : > { %712 = vmatpush1.bf16.msra.mxu0 %v711_v21  ;;  %738 = vmatpush1.bf16.msra.mxu1 %v711_v21  ;;  %v299_v51 = vld [vmem:[%s1344_s0 + $0x18] sm:$0xff] }
  0x6c   : > { %714 = vmatprep.subr.bf16.mxu0 %v713_v22  ;;  %732 = vmatprep.subr.bf16.mxu1 %v713_v22 }
  0x6f   : > { %716 = vmatpush1.bf16.msra.mxu0 %v715_v29  ;;  %739 = vmatpush1.bf16.msra.mxu1 %v715_v29  ;;  %v492_v29 = vld [vmem:[%s255_s10] sm:$0xff] }
  0x70   : > { %718 = vmatprep.subr.bf16.mxu0 %v717_v31  ;;  %733 = vmatprep.subr.bf16.mxu1 %v717_v31  ;;  %v493_v31 = vld [vmem:[%s255_s10 + $0x8] sm:$0xff]  ;;  %s1268_s10 = scalar_lea.hbm %s1349_s5, %s699_s11 }
  0x73   : > { %720 = vmatpush1.bf16.msra.mxu0 %v719_v37  ;;  %740 = vmatpush1.bf16.msra.mxu1 %v719_v37 }
  0x74   : > { %722 = vmatprep.subr.bf16.mxu0 %v721_v38  ;;  %734 = vmatprep.subr.bf16.mxu1 %v721_v38 }
  0x77   : > { %724 = vmatpush1.bf16.msra.mxu0 %v723_v43  ;;  %741 = vmatpush1.bf16.msra.mxu1 %v723_v43 }
  0x78   : > { %726 = vmatprep.subr.bf16.mxu0 %v725_v44  ;;  %735 = vmatprep.subr.bf16.mxu1 %v725_v44 }
  0x7b   : > { %728 = vmatpush1.bf16.msra.mxu0 %v727_v47  ;;  %742 = vmatpush1.bf16.msra.mxu1 %v727_v47 }
  0x7e   : > { %679 = vmatmul.mubr.msk.f32.vlgmr.msra.gmra.mrb[0].mxu0 %vm352_vm0, %v296_v48  ;;  %681 = vmatmul.mubr.msk.f32.vlgmr.msra.gmra.mrb[0].mxu1 %vm352_vm0, %v298_v49 }
  0x7f   : > { %435 = vmatprep.mubr.f32.mxu0 %v1009_v0  ;;  %447 = vmatprep.mubr.f32.mxu1 %v1009_v0 }
  0x82   : > { %680 = vmatmul.mubr.msk.f32.gmra.mrb[2].mxu0 %vm352_vm0, %v297_v50  ;;  %682 = vmatmul.mubr.msk.f32.gmra.mrb[2].mxu1 %vm352_vm0, %v299_v51 }
  0xe5   : > { %v335_v52 = vpop.permute.xlu0 %334  ;;  %v345_v61 = vpop.permute.xlu1 %344 }
  0xe9   : > { %v340_v60 = vpop.permute.xlu0 %339  ;;  %v350_v9 = vpop.permute.xlu1 %349 }
 0x151   : > { %v431_v53 = vpop.f32.mrb[0].mxu0  ;;  %v443_v54 = vpop.f32.mrb[0].mxu1 }
 0x152   : > { %v432_v55 = vadd.f32 %v431_v53, %v335_v52  ;;  %v433_v56 = vpop.f32.mrb[1].mxu0  ;;  %v445_v57 = vpop.f32.mrb[1].mxu1  ;;  %v444_v5 = vadd.f32 %v443_v54, %v345_v61 }
 0x153   : > { %v434_v58 = vadd.f32 %v433_v56, %v335_v52  ;;  %v446_v7 = vadd.f32 %v445_v57, %v345_v61 }
 0x154   : > { %v683_v59 = vmul.f32 -1.442695, %v432_v55  ;;  %v687_v10 = vmul.f32 -1.442695, %v444_v5 }
 0x155   : > { %v684_v62 = vmul.f32 -1.442695, %v434_v58  ;;  %v437_v63 = vpop.f32.mrb[2].mxu0  ;;  %v449_v1 = vpop.f32.mrb[2].mxu1  ;;  %v688_v11 = vmul.f32 -1.442695, %v446_v7 }
 0x156   : > { %808 = vpow2.f32 %v683_v59  ;;  %v438_v0 = vadd.f32 %v437_v63, %v340_v60  ;;  %v439_v2 = vpop.f32.mrb[3].mxu0  ;;  %v451_v3 = vpop.f32.mrb[3].mxu1  ;;  %v450_v12 = vadd.f32 %v449_v1, %v350_v9 }
 0x157   : > { %810 = vpow2.f32 %v684_v62  ;;  %v440_v4 = vadd.f32 %v439_v2, %v340_v60  ;;  %v452_v13 = vadd.f32 %v451_v3, %v350_v9 }
 0x158   : > { %v685_v6 = vmul.f32 -1.442695, %v438_v0 }
 0x159   : > { %v686_v8 = vmul.f32 -1.442695, %v440_v4 }
 0x15a   : > { %812 = vpow2.f32 %v685_v6 }
 0x15b   : > { %814 = vpow2.f32 %v686_v8 }
 0x15c   : > { %816 = vpow2.f32 %v687_v10 }
 0x15d   : > { %818 = vpow2.f32 %v688_v11 }
 0x15e   : > { %820 = vtanh.f32 %v450_v12 }
 0x15f   : > { %822 = vtanh.f32 %v452_v13 }
 0x160   : > { %v809_v14 = vpop.eup %808 }
 0x161   : > { %v811_v15 = vpop.eup %810  ;;  %v472_v16 = vadd.f32 1.0, %v809_v14 }
 0x162   : > { %v473_v17 = vadd.f32 1.0, %v811_v15 }
 0x163   : > { %824 = vrcp.f32 %v472_v16 }
 0x164   : > { %v813_v18 = vpop.eup %812  ;;  %826 = vrcp.f32 %v473_v17 }
 0x165   : > { %v815_v19 = vpop.eup %814  ;;  %v474_v20 = vadd.f32 1.0, %v813_v18 }
 0x166   : > { %v475_v21 = vadd.f32 1.0, %v815_v19  ;;  %v817_v22 = vpop.eup %816 }
 0x167   : > { %828 = vrcp.f32 %v474_v20  ;;  %v819_v23 = vpop.eup %818  ;;  %v476_v32 = vadd.f32 1.0, %v817_v22 }
 0x168   : > { %830 = vrcp.f32 %v475_v21  ;;  %v821_v24 = vpop.eup %820  ;;  %v477_v34 = vadd.f32 1.0, %v819_v23 }
 0x169   : > { %v823_v25 = vpop.eup %822  ;;  %832 = vrcp.f32 %v476_v32 }
 0x16a   : > { %834 = vrcp.f32 %v477_v34 }
 0x16d   : > { %v825_v26 = vpop.eup %824 }
 0x16e   : > { %v827_v27 = vpop.eup %826  ;;  %v496_v28 = vmul.f32 %v825_v26, %v821_v24 }
 0x16f   : > { %v497_v30 = vmul.f32 %v827_v27, %v823_v25 }
 0x171   : > { %v829_v33 = vpop.eup %828 }
 0x172   : > { %v831_v35 = vpop.eup %830  ;;  %v494_v36 = vmul.f32 %v829_v33, %v492_v29 }
 0x173   : > { %v495_v37 = vmul.f32 %v831_v35, %v493_v31 }
 0x174   : > { %v498_v38 = vadd.f32 %v496_v28, %v494_v36 }
 0x175   : > { %v499_v39 = vadd.f32 %v497_v30, %v495_v37 }
 0x176   : > { %836 = vtanh.f32 %v498_v38  ;;  %506 = vst [vmem:[%s291_s16] sm:$0xff] %v498_v38 }
 0x177   : > { %838 = vtanh.f32 %v499_v39  ;;  %507 = vst [vmem:[%s291_s16 + $0x8] sm:$0xff] %v499_v39 }
 0x178   : > { %913 = shalt.err (!%p910_p11)
}
 0x179   : > { %s914_s15 = scalar_lea.hbm %s1268_s10, 256  ;;  %s918_s13 = scalar_lea.hbm %s1349_s5, 512 }
 0x17a   : > { %p915_p0 = scmp.ne.s32.totalorder %s1268_s10, %s914_s15  ;;  %p919_p3 = scmp.lt.u32.totalorder %s1268_s10, %s1349_s5 }
 0x17b   : > { %p920_p10 = scmp.lt.u32.totalorder %s918_s13, %s914_s15  ;;  %p922_p13 = scmp.lt.u32.totalorder %s914_s15, %s1268_s10 }
 0x17c   : > { %p916_p4 = pnand %p915_p0, %p1362_p2 }
 0x17d   : > { %p921_p6 = por %p920_p10, %p919_p3 }
 0x17e   : > { %p917_p1 = pneg %p916_p4 }
 0x17f   : > { %p923_p12 = por %p922_p13, %p921_p6 }
 0x181   : > { %p924_p5 = pnand %p923_p12, %p917_p1 }
 0x183   : > { %927 = shalt.err (!%p924_p5)
}
 0x184   : > { %750 = dma.vmem_to_hbm [thread:$0]  (%p1362_p2), %s1270_s23, 256, %s1268_s10, %s514_s26   ;;  %v833_v40 = vpop.eup %832 }
 0x185   : > { %v835_v41 = vpop.eup %834  ;;  %s284_s6 = scalar_lea.vmem [#allocation7], %s1193_s2  ;;  %s1300_s7 = scalar_lea.hbm %s1348_s4, %s699_s11 }
 0x186   : > { %s528_s9 = sshll.u32 %s284_s6, 4  ;;  %v837_v42 = vpop.eup %836  ;;  %s509_s23 = scalar_lea.sflag [#allocation4], %s1182_s17  ;;  %s1302_s9 = int_to_ptr.vmem [resolvable:$true] %s528_s9 }
 0x187   : > { %v839_v43 = vpop.eup %838  ;;  %v502_v44 = vmul.f32 %v837_v42, %v833_v40  ;;  %s928_s2 = scalar_lea.vmem %s1302_s9, 256  ;;  %s1012_s10 = smov [#allocation7]  }
 0x188   : > { %v503_v45 = vmul.f32 %v839_v43, %v835_v41  ;;  %p929_p7 = scmp.ne.s32.totalorder %s1302_s9, %s928_s2  ;;  %s932_s22 = sshll.u32 %s1012_s10, 4  ;;  %s933_s22 = int_to_ptr.vmem [resolvable:$false] %s932_s22 }
 0x189   : > { %504 = vst [vmem:[%s284_s6] sm:$0xff] %v502_v44  ;;  %s934_s26 = scalar_lea.vmem %s933_s22, 512  ;;  %p935_p11 = scmp.lt.s32.totalorder %s1302_s9, %s933_s22 }
 0x18a   : > { %505 = vst [vmem:[%s284_s6 + $0x8] sm:$0xff] %v503_v45  ;;  %p930_p8 = pnand %p929_p7, %p1362_p2  ;;  %p936_p0 = scmp.lt.s32.totalorder %s934_s26, %s928_s2 }
 0x18c   : > { %p931_p9 = pneg %p930_p8  ;;  %p937_p4 = por %p936_p0, %p935_p11 }
 0x18e   : > { %p938_p1 = pnand %p937_p4, %p931_p9 }
 0x190   : > { %941 = shalt.err (!%p938_p1)
}
 0x191   : > { %s942_s17 = scalar_lea.hbm %s1300_s7, 256  ;;  %s946_s12 = scalar_lea.hbm %s1348_s4, 512 }
 0x192   : > { %p943_p3 = scmp.ne.s32.totalorder %s1300_s7, %s942_s17  ;;  %p947_p13 = scmp.lt.u32.totalorder %s1300_s7, %s1348_s4 }
 0x193   : > { %p948_p12 = scmp.lt.u32.totalorder %s946_s12, %s942_s17  ;;  %p950_p7 = scmp.lt.u32.totalorder %s942_s17, %s1300_s7 }
 0x194   : > { %p944_p10 = pnand %p943_p3, %p1362_p2 }
 0x195   : > { %p949_p5 = por %p948_p12, %p947_p13 }
 0x196   : > { %p945_p6 = pneg %p944_p10 }
 0x197   : > { %p951_p8 = por %p950_p7, %p949_p5 }
 0x199   : > { %p952_p9 = pnand %p951_p8, %p945_p6 }
 0x19b   : > { %955 = shalt.err (!%p952_p9)
}
 0x19c   : > { %749 = dma.vmem_to_hbm [thread:$0]  (%p1362_p2), %s1302_s9, 256, %s1300_s7, %s509_s23  }
 0x19d PF: > { %s554_s16 = sand.u32 1, %s990_s18   ;;  %p1363_p11 = scmp.ne.s32.totalorder %s1355_s30, 0 }
 0x19e   : > { %p1364_p0 = scmp.ge.s32.totalorder %s1002_s21, 2  ;;  %s555_s25 = scalar_lea.sflag [#allocation4], %s554_s16 }
 0x1a0   : > { %p761_p4 = pnand %p1364_p0, %p1363_p11 }
 0x1a2   : > { %981 = dma.done.wait (!%p761_p4), %s555_s25, 256  }
 0x1a3   : > { %983 = vsyncadd (!%p761_p4), %s555_s25, 4294967040  ;;  %s564_s6 = scalar_lea.sflag [#allocation9], %s554_s16 }
 0x1a4   : > { %985 = dma.done.wait (!%p761_p4), %s564_s6, 256  }
 0x1a5   : > { %987 = vsyncadd (!%p761_p4), %s564_s6, 4294967040  ;;  %p25_p2 = scmp.ge.s32.totalorder %s1068_s24, 4   ;;  %s1365_s18 = smov %s994_s19 }
 0x1a6   : > { %s1366_s19 = smov %s998_s20  ;;  %s1367_s20 = smov %s1080_s27 }
 0x1a7   : > { %s1368_s21 = smov %s1068_s24  ;;  %27 = sbr.rel (!%p25_p2) target bundleno = 11 (0xb), region = 111 }
 0x1ae   :  { %569 = vsyncpa [#allocation3], 1 }
 0x1af   :  { %571 = vsyncpa [#allocation3 + $0x1], 1 }
 0x1b0   :  { %572 = vsyncpa [#allocation6], 1 }
 0x1b1   :  { %574 = vsyncpa [#allocation6 + $0x1], 1 }
 0x1b2   :  { %575 = vsyncpa [#allocation4], 1 }
 0x1b3   :  { %577 = vsyncpa [#allocation4 + $0x1], 1 }
 0x1b4   :  { %578 = vsyncpa [#allocation9], 1 }
 0x1b5   :  { %580 = vsyncpa [#allocation9 + $0x1], 1 }

</bundles_post_ra>
